<compile_context>
chip_gen: v7x
topology: tpu7x:2x2x1
jax: 0.10.0
libtpu: 0.0.40
codegen_flags: <defaults>
</compile_context>

<pallas_src>
import jax
import jax.numpy as jnp
from jax.experimental import pallas as pl
from jax.experimental.pallas import tpu as pltpu

HIDDEN = 128


def _round_up(x, m):
    return ((x + m - 1) // m) * m


def _choose_batch_tile(batch, tile_b):
    """Pick (tile_b_eff, padded_batch). Keeps >=2 grid steps when tiling is needed."""
    b_al = _round_up(max(batch, 1), 8)
    tile_b = max(8, _round_up(tile_b, 8))
    if b_al <= tile_b:
        return b_al, b_al                     # whole batch in one tile
    half = _round_up((b_al + 1) // 2, 8)      # aim for >= 2 parallel grid steps (v7x)
    tile = min(tile_b, half)
    return tile, _round_up(b_al, tile)


def dqn_kernel(x_ref, w1_ref, b1_ref, w2_ref, b2_ref, w3_ref, b3_ref, out_ref):
    x = x_ref[...]                                   # (TILE_B, K) f32
    k_in = x_ref.shape[1]

    if k_in <= 16:
        # Tiny contraction: unrolled broadcast FMAs on the VPU (f32) instead of a
        # 97%-zero MXU pass.  Static Python loop -> fully unrolled at trace time.
        w1 = w1_ref[...]                             # (K, H) f32
        h1 = b1_ref[...] + x[:, 0:1] * w1[0:1, :]
        for k in range(1, k_in):
            h1 = h1 + x[:, k:k + 1] * w1[k:k + 1, :]
    else:
        h1 = jnp.dot(x.astype(jnp.bfloat16), w1_ref[...].astype(jnp.bfloat16),
                     preferred_element_type=jnp.float32) + b1_ref[...]
    h1 = jnp.maximum(h1, 0.0)                        # f32 ReLU (VPU)

    h2 = jnp.dot(h1.astype(w2_ref.dtype), w2_ref[...],
                 preferred_element_type=jnp.float32) + b2_ref[...]
    h2 = jnp.maximum(h2, 0.0)

    out = jnp.dot(h2.astype(w3_ref.dtype), w3_ref[...],
                  preferred_element_type=jnp.float32) + b3_ref[...]
    out_ref[...] = out.astype(out_ref.dtype)         # narrow (TILE_B, num_actions) store


def dqn_forward(x, params, *, tile_b=1024):
    """Fused DQN forward. x: (batch, num_inputs) f32 -> (batch, num_actions) f32."""
    w1, b1, w2, b2, w3, b3 = params
    batch, num_inputs = x.shape
    hidden = w1.shape[1]
    num_actions = w3.shape[1]

    tile, b_pad = _choose_batch_tile(batch, tile_b)

    xp = x.astype(jnp.float32)
    if b_pad != batch:
        xp = jnp.pad(xp, ((0, b_pad - batch), (0, 0)))   # batch rows only; no K pad

    w1p = w1.astype(jnp.float32)          # layer 1 runs on the VPU in f32
    b1p = b1.astype(jnp.float32)
    w2p = w2.astype(jnp.bfloat16)         # MXU operands
    b2p = b2.astype(jnp.float32)
    w3p = w3.astype(jnp.bfloat16)
    b3p = b3.astype(jnp.float32)

    weight_bytes = (num_inputs * hidden * 4 + hidden * hidden * 2
                    + hidden * num_actions * 2 + (2 * hidden + num_actions) * 4)
    cost = pl.CostEstimate(
        flops=2 * b_pad * (num_inputs * hidden + hidden * hidden + hidden * num_actions),
        transcendentals=0,
        bytes_accessed=b_pad * (num_inputs + num_actions) * 4 + weight_bytes,
    )

    const = lambda i: (0, 0)  # weights/biases: same block every step -> VMEM-resident
    out = pl.pallas_call(
        dqn_kernel,
        out_shape=jax.ShapeDtypeStruct((b_pad, num_actions), jnp.float32),
        grid=(b_pad // tile,),
        in_specs=[
            pl.BlockSpec((tile, num_inputs), lambda i: (i, 0)),   # x tile streams
            pl.BlockSpec((num_inputs, hidden), const),            # w1
            pl.BlockSpec((1, hidden), const),                     # b1
            pl.BlockSpec((hidden, hidden), const),                # w2
            pl.BlockSpec((1, hidden), const),                     # b2
            pl.BlockSpec((hidden, num_actions), const),           # w3
            pl.BlockSpec((1, num_actions), const),                # b3
        ],
        out_specs=pl.BlockSpec((tile, num_actions), lambda i: (i, 0)),
        compiler_params=pltpu.CompilerParams(
            dimension_semantics=("parallel",),   # batch tiles shard across v7x's 2 TCs
        ),
        cost_estimate=cost,
    )(xp, w1p, b1p, w2p, b2p, w3p, b3p)

    return out if b_pad == batch else out[:batch]


def init_dqn_params(key, num_inputs, num_actions, hidden=HIDDEN):
    """Deterministic init mimicking nn.Linear default: U(-1/sqrt(fan_in), 1/sqrt(fan_in))."""
    keys = jax.random.split(key, 6)

    def linear(kw, kb, fan_in, fan_out):
        bound = 1.0 / jnp.sqrt(jnp.float32(fan_in))
        # stored as (in_features, out_features) -> transposed wrt PyTorch
        w = jax.random.uniform(kw, (fan_in, fan_out), jnp.float32, -bound, bound)
        b = jax.random.uniform(kb, (1, fan_out), jnp.float32, -bound, bound)
        return w, b

    w1, b1 = linear(keys[0], keys[1], num_inputs, hidden)
    w2, b2 = linear(keys[2], keys[3], hidden, hidden)
    w3, b3 = linear(keys[4], keys[5], hidden, num_actions)
    return (w1, b1, w2, b2, w3, b3)


def dqn_reference(x, params):
    """Pure-JAX reference mirroring the kernel recipe (f32 layer 1, bf16 MXU layers 2/3).

    Note: Q-values differ from a pure-f32 PyTorch DQN at ~1e-2 relative level because
    layers 2/3 feed bf16 operands to the MXU (f32 accumulation) — fine for RL use.
    """
    w1, b1, w2, b2, w3, b3 = params
    h1 = jnp.maximum(
        jnp.dot(x, w1, preferred_element_type=jnp.float32,
                precision=jax.lax.Precision.HIGHEST) + b1, 0.0)
    h2 = jnp.maximum(
        jnp.dot(h1.astype(jnp.bfloat16), w2.astype(jnp.bfloat16),
                preferred_element_type=jnp.float32) + b2, 0.0)
    return jnp.dot(h2.astype(jnp.bfloat16), w3.astype(jnp.bfloat16),
                   preferred_element_type=jnp.float32) + b3


if __name__ == "__main__":
    num_inputs = 4     # e.g. CartPole observation size
    num_actions = 2    # e.g. CartPole action space
    batch = 2          # small demo batch; kernel tiles/pads internally

    key = jax.random.PRNGKey(0)
    k_x, k_p, k_x2 = jax.random.split(key, 3)
    x = jax.random.normal(k_x, (batch, num_inputs), dtype=jnp.float32)
    params = init_dqn_params(k_p, num_inputs, num_actions)

    q_values = jax.block_until_ready(dqn_forward(x, params))
    ref = dqn_reference(x, params)
    assert q_values.shape == (batch, num_actions)
    assert jnp.allclose(q_values, ref, atol=2e-3, rtol=2e-3)

    # Also exercise the batch-padding / multi-step-grid path (still tiny shapes).
    x2 = jax.random.normal(k_x2, (33, num_inputs), dtype=jnp.float32)
    q2 = jax.block_until_ready(dqn_forward(x2, params, tile_b=16))
    ref2 = dqn_reference(x2, params)
    assert q2.shape == (33, num_actions)
    assert jnp.allclose(q2, ref2, atol=2e-3, rtol=2e-3)

    print("KERNEL_OK")
</pallas_src>

<mosaic_0001>
module attributes {stable_mosaic.version = 11 : i64} {
  func.func @dqn_kernel(%arg0: i32, %arg1: memref<8x4xf32, #tpu.memory_space<vmem>>, %arg2: memref<4x128xf32, #tpu.memory_space<vmem>>, %arg3: memref<1x128xf32, #tpu.memory_space<vmem>>, %arg4: memref<128x128xbf16, #tpu.memory_space<vmem>>, %arg5: memref<1x128xf32, #tpu.memory_space<vmem>>, %arg6: memref<128x2xbf16, #tpu.memory_space<vmem>>, %arg7: memref<1x2xf32, #tpu.memory_space<vmem>>, %arg8: memref<8x2xf32, #tpu.memory_space<vmem>>) attributes {dimension_semantics = [#tpu.dimension_semantics<parallel>], iteration_bounds = array<i64: 1>, scalar_prefetch = 0 : i64, scratch_operands = 0 : i64, tpu.core_type = #tpu.core_type<tc>, window_params = [{transform_indices = @transform_0, window_bounds = array<i64: 8, 4>}, {pipeline_mode = #tpu.pipeline_mode<synchronous>, transform_indices = @transform_1, window_bounds = array<i64: 4, 128>}, {pipeline_mode = #tpu.pipeline_mode<synchronous>, transform_indices = @transform_2, window_bounds = array<i64: 1, 128>}, {pipeline_mode = #tpu.pipeline_mode<synchronous>, transform_indices = @transform_3, window_bounds = array<i64: 128, 128>}, {pipeline_mode = #tpu.pipeline_mode<synchronous>, transform_indices = @transform_4, window_bounds = array<i64: 1, 128>}, {pipeline_mode = #tpu.pipeline_mode<synchronous>, transform_indices = @transform_5, window_bounds = array<i64: 128, 2>}, {pipeline_mode = #tpu.pipeline_mode<synchronous>, transform_indices = @transform_6, window_bounds = array<i64: 1, 2>}, {transform_indices = @transform_7, window_bounds = array<i64: 8, 2>}]} {
    %c0 = arith.constant 0 : index
    %c0_0 = arith.constant 0 : index
    %0 = vector.load %arg1[%c0, %c0_0] : memref<8x4xf32, #tpu.memory_space<vmem>>, vector<8x4xf32>
    %c0_1 = arith.constant 0 : index
    %c0_2 = arith.constant 0 : index
    %1 = vector.load %arg2[%c0_1, %c0_2] : memref<4x128xf32, #tpu.memory_space<vmem>>, vector<4x128xf32>
    %c0_3 = arith.constant 0 : index
    %c0_4 = arith.constant 0 : index
    %2 = vector.load %arg3[%c0_3, %c0_4] : memref<1x128xf32, #tpu.memory_space<vmem>>, vector<1x128xf32>
    %3 = vector.extract_strided_slice %0 {offsets = [0, 0], sizes = [8, 1], strides = [1, 1]} : vector<8x4xf32> to vector<8x1xf32>
    %4 = vector.extract_strided_slice %1 {offsets = [0, 0], sizes = [1, 128], strides = [1, 1]} : vector<4x128xf32> to vector<1x128xf32>
    %5 = vector.broadcast %3 : vector<8x1xf32> to vector<8x128xf32>
    %6 = vector.broadcast %4 : vector<1x128xf32> to vector<8x128xf32>
    %7 = arith.mulf %5, %6 : vector<8x128xf32>
    %8 = vector.broadcast %2 : vector<1x128xf32> to vector<8x128xf32>
    %9 = arith.addf %8, %7 : vector<8x128xf32>
    %10 = vector.extract_strided_slice %0 {offsets = [0, 1], sizes = [8, 1], strides = [1, 1]} : vector<8x4xf32> to vector<8x1xf32>
    %11 = vector.extract_strided_slice %1 {offsets = [1, 0], sizes = [1, 128], strides = [1, 1]} : vector<4x128xf32> to vector<1x128xf32>
    %12 = vector.broadcast %10 : vector<8x1xf32> to vector<8x128xf32>
    %13 = vector.broadcast %11 : vector<1x128xf32> to vector<8x128xf32>
    %14 = arith.mulf %12, %13 : vector<8x128xf32>
    %15 = arith.addf %9, %14 : vector<8x128xf32>
    %16 = vector.extract_strided_slice %0 {offsets = [0, 2], sizes = [8, 1], strides = [1, 1]} : vector<8x4xf32> to vector<8x1xf32>
    %17 = vector.extract_strided_slice %1 {offsets = [2, 0], sizes = [1, 128], strides = [1, 1]} : vector<4x128xf32> to vector<1x128xf32>
    %18 = vector.broadcast %16 : vector<8x1xf32> to vector<8x128xf32>
    %19 = vector.broadcast %17 : vector<1x128xf32> to vector<8x128xf32>
    %20 = arith.mulf %18, %19 : vector<8x128xf32>
    %21 = arith.addf %15, %20 : vector<8x128xf32>
    %22 = vector.extract_strided_slice %0 {offsets = [0, 3], sizes = [8, 1], strides = [1, 1]} : vector<8x4xf32> to vector<8x1xf32>
    %23 = vector.extract_strided_slice %1 {offsets = [3, 0], sizes = [1, 128], strides = [1, 1]} : vector<4x128xf32> to vector<1x128xf32>
    %24 = vector.broadcast %22 : vector<8x1xf32> to vector<8x128xf32>
    %25 = vector.broadcast %23 : vector<1x128xf32> to vector<8x128xf32>
    %26 = arith.mulf %24, %25 : vector<8x128xf32>
    %27 = arith.addf %21, %26 : vector<8x128xf32>
    %cst = arith.constant 0.000000e+00 : f32
    %28 = vector.broadcast %cst : f32 to vector<8x128xf32>
    %29 = arith.maximumf %27, %28 : vector<8x128xf32>
    %30 = arith.truncf %29 : vector<8x128xf32> to vector<8x128xbf16>
    %c0_5 = arith.constant 0 : index
    %c0_6 = arith.constant 0 : index
    %31 = vector.load %arg4[%c0_5, %c0_6] : memref<128x128xbf16, #tpu.memory_space<vmem>>, vector<128x128xbf16>
    %cst_7 = arith.constant dense<0.000000e+00> : vector<8x128xf32>
    %32 = tpu.matmul %30, %31, %cst_7 {dimension_numbers = #tpu.dot_dimension_numbers<[1], [0], [0], [1], [0, 0, 1, 1], [], []>} : vector<8x128xbf16>, vector<128x128xbf16>, vector<8x128xf32> -> vector<8x128xf32>
    %c0_8 = arith.constant 0 : index
    %c0_9 = arith.constant 0 : index
    %33 = vector.load %arg5[%c0_8, %c0_9] : memref<1x128xf32, #tpu.memory_space<vmem>>, vector<1x128xf32>
    %34 = vector.broadcast %33 : vector<1x128xf32> to vector<8x128xf32>
    %35 = arith.addf %32, %34 : vector<8x128xf32>
    %cst_10 = arith.constant 0.000000e+00 : f32
    %36 = vector.broadcast %cst_10 : f32 to vector<8x128xf32>
    %37 = arith.maximumf %35, %36 : vector<8x128xf32>
    %38 = arith.truncf %37 : vector<8x128xf32> to vector<8x128xbf16>
    %c0_11 = arith.constant 0 : index
    %c0_12 = arith.constant 0 : index
    %39 = vector.load %arg6[%c0_11, %c0_12] : memref<128x2xbf16, #tpu.memory_space<vmem>>, vector<128x2xbf16>
    %cst_13 = arith.constant dense<0.000000e+00> : vector<8x2xf32>
    %40 = tpu.matmul %38, %39, %cst_13 {dimension_numbers = #tpu.dot_dimension_numbers<[1], [0], [0], [1], [0, 0, 1, 1], [], []>} : vector<8x128xbf16>, vector<128x2xbf16>, vector<8x2xf32> -> vector<8x2xf32>
    %c0_14 = arith.constant 0 : index
    %c0_15 = arith.constant 0 : index
    %41 = vector.load %arg7[%c0_14, %c0_15] : memref<1x2xf32, #tpu.memory_space<vmem>>, vector<1x2xf32>
    %42 = vector.broadcast %41 : vector<1x2xf32> to vector<8x2xf32>
    %43 = arith.addf %40, %42 : vector<8x2xf32>
    %c0_16 = arith.constant 0 : index
    %c0_17 = arith.constant 0 : index
    %44 = vector.load %arg8[%c0_16, %c0_17] : memref<8x2xf32, #tpu.memory_space<vmem>>, vector<8x2xf32>
    tpu.vector_store %arg8[%c0_16, %c0_17], %43 {strides = array<i32>} : memref<8x2xf32, #tpu.memory_space<vmem>>, vector<8x2xf32>,
    return
  }
  func.func @transform_0(%arg0: i32) -> (i32, i32) {
    %c0_i32 = arith.constant 0 : i32
    %c0_i32_0 = arith.constant 0 : i32
    return %arg0, %c0_i32 : i32, i32
  }
  func.func @transform_1(%arg0: i32) -> (i32, i32) {
    %c0_i32 = arith.constant 0 : i32
    %c0_i32_0 = arith.constant 0 : i32
    %c0_i32_1 = arith.constant 0 : i32
    return %c0_i32, %c0_i32_0 : i32, i32
  }
  func.func @transform_2(%arg0: i32) -> (i32, i32) {
    %c0_i32 = arith.constant 0 : i32
    %c0_i32_0 = arith.constant 0 : i32
    %c0_i32_1 = arith.constant 0 : i32
    return %c0_i32, %c0_i32_0 : i32, i32
  }
  func.func @transform_3(%arg0: i32) -> (i32, i32) {
    %c0_i32 = arith.constant 0 : i32
    %c0_i32_0 = arith.constant 0 : i32
    %c0_i32_1 = arith.constant 0 : i32
    return %c0_i32, %c0_i32_0 : i32, i32
  }
  func.func @transform_4(%arg0: i32) -> (i32, i32) {
    %c0_i32 = arith.constant 0 : i32
    %c0_i32_0 = arith.constant 0 : i32
    %c0_i32_1 = arith.constant 0 : i32
    return %c0_i32, %c0_i32_0 : i32, i32
  }
  func.func @transform_5(%arg0: i32) -> (i32, i32) {
    %c0_i32 = arith.constant 0 : i32
    %c0_i32_0 = arith.constant 0 : i32
    %c0_i32_1 = arith.constant 0 : i32
    return %c0_i32, %c0_i32_0 : i32, i32
  }
  func.func @transform_6(%arg0: i32) -> (i32, i32) {
    %c0_i32 = arith.constant 0 : i32
    %c0_i32_0 = arith.constant 0 : i32
    %c0_i32_1 = arith.constant 0 : i32
    return %c0_i32, %c0_i32_0 : i32, i32
  }
  func.func @transform_7(%arg0: i32) -> (i32, i32) {
    %c0_i32 = arith.constant 0 : i32
    %c0_i32_0 = arith.constant 0 : i32
    return %arg0, %c0_i32 : i32, i32
  }
}

</mosaic_0001>

<bundles_post_ra>
// kernel: tpu_custom_call.1
= control target key start
LH: loop header
LB: loop body
LE: loop exit
PB: predicated region body
PF: predicated region fallthrough
CT: control target
= control target key end

     0   :  { %v413_v0 = vmov 0   ;;  %v414_v2 = vmov 2   ;;  %v415_v4 = vmov 0.0   ;;  %v416_v6 = vmov 1   ;;  %s543_s0 = inlined_call_operand.vmem [shape: f32[8,4], index: 0, kind: input, shape index: {}]   ;;  %s544_s3 = inlined_call_operand.vmem [shape: bf16[128,128], index: 3, kind: input, shape index: {}]   ;;  %s545_s5 = inlined_call_operand.vmem [shape: bf16[128,2], index: 5, kind: input, shape index: {}]   ;;  %s546_s1 = inlined_call_operand.vmem [shape: f32[4,128], index: 1, kind: input, shape index: {}]   ;;  %s547_s2 = inlined_call_operand.vmem [shape: f32[1,128], index: 2, kind: input, shape index: {}]   ;;  %s548_s4 = inlined_call_operand.vmem [shape: f32[1,128], index: 4, kind: input, shape index: {}]   ;;  %s549_s6 = inlined_call_operand.vmem [shape: f32[1,2], index: 6, kind: input, shape index: {}]   ;;  %s550_s7 = inlined_call_operand.vmem [shape: f32[8,2], index: 7, kind: output, shape index: {}]  }
   0x1   :  { %392 = vset.pattern.permute.xlu0 %v413_v0  ;;  %v27_v1 = vld [vmem:[%s543_s0] sm:$0xff]  ;;  %394 = vset.pattern.permute.xlu1 %v414_v2  ;;  %v398_v5 = vld [vmem:[%s544_s3 + $0x8] sm:$0xff]   ;;  %v417_v7 = vmov 3   ;;  %v399_v8 = vld [vmem:[%s544_s3 + $0x10] sm:$0xff]   ;;  %vm418_vm0 = vmmov 0   ;;  %v35_v20 = vlaneseq  ;;  %vm303_vm1 = vcmask 15360  }
   0x2   :  { %32 = vperm.xlu0 %392, %v27_v1   ;;  %58 = vperm.xlu1 %394, %v27_v1   ;;  %v397_v3 = vld [vmem:[%s544_s3] sm:$0xff]   ;;  %v400_v9 = vld [vmem:[%s544_s3 + $0x18] sm:$0xff]   ;;  %v402_v11 = vld [vmem:[%s544_s3 + $0x28] sm:$0xff]  }
   0x3   :  { %346 = vmatprep.subr.bf16.mxu0 %v415_v4  ;;  %366 = vmatprep.subr.bf16.mxu1 %v415_v4  ;;  %v401_v10 = vld [vmem:[%s544_s3 + $0x20] sm:$0xff]   ;;  %v406_v13 = vld [vmem:[%s545_s5 + $0x8] sm:$0xff]   ;;  %v403_v14 = vld [vmem:[%s544_s3 + $0x30] sm:$0xff]   ;;  %v36_v21 = vshrl.u32 %v35_v20, 7 }
   0x4   :  { %347 = vmatpush3.bf16.msra.mxu0 %v397_v3  ;;  %362 = vmatprep.mubr.msk.bf16.mxu0 %vm418_vm0, %v415_v4  ;;  %v405_v12 = vld [vmem:[%s545_s5] sm:$0xff]   ;;  %v407_v15 = vld [vmem:[%s545_s5 + $0x10] sm:$0xff]   ;;  %v404_v16 = vld [vmem:[%s544_s3 + $0x38] sm:$0xff]  }
   0x5   :  { %348 = vmatprep.subr.bf16.mxu0 %v415_v4  ;;  %382 = vmatprep.mubr.msk.bf16.mxu1 %vm418_vm0, %v415_v4  ;;  %v408_v17 = vld [vmem:[%s545_s5 + $0x18] sm:$0xff]   ;;  %v409_v18 = vld [vmem:[%s545_s5 + $0x20] sm:$0xff]   ;;  %v410_v19 = vld [vmem:[%s545_s5 + $0x28] sm:$0xff]   ;;  %v37_v22 = vsub.s32 0, %v36_v21  ;;  %v53_v25 = vsub.s32 1, %v36_v21  ;;  %v63_v27 = vsub.s32 2, %v36_v21 }
   0x6   :  { %393 = vset.pattern.permute.xlu0 %v416_v6  ;;  %395 = vset.pattern.permute.xlu1 %v417_v7  ;;  %v28_v23 = vld [vmem:[%s546_s1] sm:$0xf]  ;;  %v73_v29 = vsub.s32 3, %v36_v21  ;;  %v411_v46 = vld [vmem:[%s545_s5 + $0x30] sm:$0xff]   ;;  %v412_v47 = vld [vmem:[%s545_s5 + $0x38] sm:$0xff]  }
   0x7   :  { %48 = vperm.xlu0 %393, %v27_v1   ;;  %68 = vperm.xlu1 %395, %v27_v1   ;;  %v38_v24 = vrot.slane %v28_v23, %v37_v22  ;;  %v54_v31 = vrot.slane %v28_v23, %v53_v25  ;;  %v309_v32 = vld [vmem:[%s547_s2] ss:$0 sm:$0xff]  ;;  %v64_v33 = vrot.slane %v28_v23, %v63_v27 }
   0x8   :  { %349 = vmatpush3.bf16.msra.mxu0 %v398_v5  ;;  %367 = vmatpush3.bf16.msra.mxu1 %v405_v12  ;;  %v74_v34 = vrot.slane %v28_v23, %v73_v29  ;;  %v310_v48 = vld [vmem:[%s548_s4] ss:$0 sm:$0xff] }
   0x9   :  { %350 = vmatprep.subr.bf16.mxu0 %v415_v4  ;;  %368 = vmatprep.subr.bf16.mxu1 %v415_v4  ;;  %v319_v56 = vld [vmem:[%s549_s6] ss:$0 sm:$0xff] }
   0xb   :  { %396 = vset.pattern.permute.xlu0 %v417_v7 }
   0xc   :  { %351 = vmatpush3.bf16.msra.mxu0 %v399_v8  ;;  %369 = vmatpush3.bf16.msra.mxu1 %v406_v13 }
   0xd   :  { %352 = vmatprep.subr.bf16.mxu0 %v415_v4  ;;  %370 = vmatprep.subr.bf16.mxu1 %v415_v4 }
  0x10   :  { %353 = vmatpush3.bf16.msra.mxu0 %v400_v9  ;;  %371 = vmatpush3.bf16.msra.mxu1 %v407_v15 }
  0x11   :  { %354 = vmatprep.subr.bf16.mxu0 %v415_v4  ;;  %372 = vmatprep.subr.bf16.mxu1 %v415_v4 }
  0x14   :  { %355 = vmatpush3.bf16.msra.mxu0 %v401_v10  ;;  %373 = vmatpush3.bf16.msra.mxu1 %v408_v17 }
  0x15   :  { %356 = vmatprep.subr.bf16.mxu0 %v415_v4  ;;  %374 = vmatprep.subr.bf16.mxu1 %v415_v4 }
  0x18   :  { %357 = vmatpush3.bf16.msra.mxu0 %v402_v11  ;;  %375 = vmatpush3.bf16.msra.mxu1 %v409_v18 }
  0x19   :  { %358 = vmatprep.subr.bf16.mxu0 %v415_v4  ;;  %376 = vmatprep.subr.bf16.mxu1 %v415_v4 }
  0x1c   :  { %359 = vmatpush3.bf16.msra.mxu0 %v403_v14  ;;  %377 = vmatpush3.bf16.msra.mxu1 %v410_v19 }
  0x1d   :  { %360 = vmatprep.subr.bf16.mxu0 %v415_v4  ;;  %378 = vmatprep.subr.bf16.mxu1 %v415_v4 }
  0x20   :  { %361 = vmatpush3.bf16.msra.mxu0 %v404_v16  ;;  %379 = vmatpush3.bf16.msra.mxu1 %v411_v46 }
  0x21   :  { %380 = vmatprep.subr.bf16.mxu1 %v415_v4 }
  0x24   :  { %381 = vmatpush3.bf16.msra.mxu1 %v412_v47 }
  0x81   :  { %v33_v26 = vpop.permute.xlu0 %32  ;;  %v59_v28 = vpop.permute.xlu1 %58 }
  0x82   :  { %v39_v30 = vmul.f32 %v38_v24, %v33_v26  ;;  %v65_v39 = vmul.f32 %v64_v33, %v59_v28 }
  0x84   :  { %v46_v37 = vadd.f32 %v309_v32, %v39_v30 }
  0x86   :  { %v49_v35 = vpop.permute.xlu0 %48  ;;  %v69_v36 = vpop.permute.xlu1 %68 }
  0x87   :  { %v55_v38 = vmul.f32 %v54_v31, %v49_v35  ;;  %v75_v41 = vmul.f32 %v74_v34, %v69_v36 }
  0x89   :  { %v56_v40 = vadd.f32 %v55_v38, %v46_v37 }
  0x8b   :  { %v66_v42 = vadd.f32 %v65_v39, %v56_v40 }
  0x8d   :  { %v76_v43 = vadd.f32 %v75_v41, %v66_v42 }
  0x8f   :  { %v77_v44 = vmax.f32 %v76_v43, 0.0 }
  0x91   :  { %v78_v45 = vpack.c.bf16 %v77_v44, %v77_v44 }
  0x93   :  { %363 = vmatmul.mubr.bf16.vlgmr.msra.gmra.mrb[0].mxu0 %v78_v45 }
 0x166   :  { %v184_v49 = vpop.f32.mrb[0].mxu0 }
 0x167   :  { %v185_v50 = vadd.f32 %v310_v48, %v184_v49  ;;  %v364_v51 = vpop.f32.mrb[1].mxu0 }
 0x168   :  { %v187_v52 = vpop.f32.mrb[2].mxu0 }
 0x169   :  { %v190_v53 = vmax.f32 %v185_v50, 0.0  ;;  %v365_v54 = vpop.f32.mrb[3].mxu0 }
 0x16b   :  { %v191_v55 = vpack.c.bf16 %v190_v53, %v190_v53 }
 0x16d   :  { %383 = vmatmul.mubr.bf16.vlgmr.msra.gmra.mrb[0].mxu1 %v191_v55 }
 0x240   :  { %v297_v57 = vpop.f32.mrb[0].mxu1 }
 0x241   :  { %v298_v58 = vadd.f32 %v319_v56, %v297_v57  ;;  %v384_v59 = vpop.f32.mrb[1].mxu1 }
 0x242   :  { %v300_v60 = vpop.f32.mrb[2].mxu1 }
 0x243   :  { %304 = vst.msk [vmem:[%s550_s7] sm:$0xff] %vm303_vm1, %v298_v58  ;;  %v385_v61 = vpop.f32.mrb[3].mxu1 }

</bundles_post_ra>
